<compile_context>
chip_gen: v5e
topology: v5e:2x2
jax: 0.10.0
libtpu: 0.0.40
codegen_flags: <defaults>
</compile_context>

<pallas_src>
import functools

import jax
import jax.numpy as jnp
from jax.experimental import pallas as pl
from jax.experimental.pallas import tpu as pltpu

_EPS = 1e-5          # PyTorch InstanceNorm2d default eps
_N_STREAMS = 6       # 5 inputs + 1 output


def _cdiv(a, b):
    return -(-a // b)


def _round_up(a, m):
    return _cdiv(a, m) * m


def _round_down(a, m):
    return (a // m) * m


def _vmem_capacity_bytes():
    try:
        info = pltpu.get_tpu_info()
        cap = getattr(info, "vmem_capacity_bytes", None)
        if cap:
            return int(cap)
    except Exception:
        pass
    # Generation-aware fallback: only v7x has 64 MiB per TensorCore.
    try:
        kind = jax.devices()[0].device_kind.lower()
        if "v7" in kind:
            return 64 * 1024 * 1024
    except Exception:
        pass
    return 128 * 1024 * 1024


# ----------------------------- kernels -------------------------------------


def _guide_norm_single_pass_kernel(x_ref, g1_ref, b1_ref, g2_ref, b2_ref,
                                   o_ref, *, inv_hw):
    # Block width == the full H*W row (no lane padding), so sums are exact.
    x = x_ref[...].astype(jnp.float32)
    s = jnp.sum(x, axis=-1, keepdims=True)
    ss = jnp.sum(x * x, axis=-1, keepdims=True)
    mean = s * inv_hw
    # E[x^2] - E[x]^2 in f32, clamped >= 0 (low-bit diffs vs (x-mean)^2 form).
    var = jnp.maximum(ss * inv_hw - mean * mean, 0.0)
    inv_std = jax.lax.rsqrt(var + _EPS)

    gamma = g1_ref[...].astype(jnp.float32) * g2_ref[...].astype(jnp.float32)
    beta = b1_ref[...].astype(jnp.float32) * b2_ref[...].astype(jnp.float32)

    # Re-read x for the normalize so the first f32 copy need not stay live
    # across the cross-lane reductions (reduces vreg/VMEM pressure on v7x;
    # the re-read is a cheap VMEM vld).
    xn = x_ref[...].astype(jnp.float32)
    out = (xn - mean) * inv_std * (1.0 + gamma) + beta
    # Note: when NC % rows_block != 0 the trailing block reads OOB rows; their
    # garbage stats (possibly inf from rsqrt) are never stored because Pallas
    # masks OOB output writes.
    o_ref[...] = out.astype(o_ref.dtype)


def _guide_norm_two_pass_kernel(x_ref, g1_ref, b1_ref, g2_ref, b2_ref, o_ref,
                                sum_ref, sumsq_ref, *, inv_hw, hw, hw_block,
                                ragged):
    # grid = (row_blocks, 2 passes, hw_chunks); pass 0 accumulates statistics
    # in VMEM scratch, pass 1 normalizes + writes output per HW chunk.
    p = pl.program_id(1)
    h = pl.program_id(2)
    x = x_ref[...].astype(jnp.float32)
    if ragged:
        # The last HW chunk reads past the true row length; zero those lanes
        # so the statistics stay exact.  The corresponding output lanes are
        # out of bounds and dropped by Pallas on writeback.
        lane = h * hw_block + jax.lax.broadcasted_iota(jnp.int32, x.shape, 1)
        x = jnp.where(lane < hw, x, 0.0)

    @pl.when(jnp.logical_and(p == 0, h == 0))
    def _():
        sum_ref[...] = jnp.zeros_like(sum_ref)
        sumsq_ref[...] = jnp.zeros_like(sumsq_ref)

    @pl.when(p == 0)
    def _():
        sum_ref[...] += jnp.sum(x, axis=-1, keepdims=True)
        sumsq_ref[...] += jnp.sum(x * x, axis=-1, keepdims=True)

    @pl.when(p == 1)
    def _():
        mean = sum_ref[...] * inv_hw
        var = jnp.maximum(sumsq_ref[...] * inv_hw - mean * mean, 0.0)
        inv_std = jax.lax.rsqrt(var + _EPS)
        gamma = g1_ref[...].astype(jnp.float32) * g2_ref[...].astype(jnp.float32)
        beta = b1_ref[...].astype(jnp.float32) * b2_ref[...].astype(jnp.float32)
        out = (x - mean) * inv_std * (1.0 + gamma) + beta
        # o_spec is pinned at (r, 0) during pass 0 and only written here in
        # pass 1; Pallas writes output blocks back only on block-index change,
        # so no uninitialized data is ever flushed.  Do not change o_spec's
        # index_map without revisiting this.
        o_ref[...] = out.astype(o_ref.dtype)


# --------------------------- tile planning ----------------------------------


def _plan(NC, HW, itemsize, rows_block, hw_block):
    """Return (rows_block, hw_block, single_pass, ragged, n_x_bufs, vmem_limit)."""
    sub = max(8, 32 // itemsize)          # sublane packing (8 f32, 16 bf16, 32 i8)
    cap = _vmem_capacity_bytes()
    small_vmem = cap <= 96 * 1024 * 1024  # v7x: 64 MiB per TensorCore
    # Target for growing tiles vs. hard ceiling to stay on the single-pass path.
    budget = int(cap * (0.45 if small_vmem else 0.68))
    hard_limit = int(cap * (0.55 if small_vmem else 0.85))
    HW_alloc = _round_up(HW, 128)         # lane-padded VMEM footprint

    def tile_bytes(rows, hw, n_x_bufs):
        # 6 streams, double-buffered (x may get a 3rd buffer), plus one
        # explicit f32 upcast / result temporary (matters for bf16 on v7x).
        pipeline = (2 * (_N_STREAMS - 1) + n_x_bufs) * rows * hw * itemsize
        f32_temp = rows * hw * 4
        return pipeline + f32_temp

    if hw_block is None:
        single_pass = tile_bytes(sub, HW_alloc, 2) <= hard_limit
    else:
        hw_block = min(_round_up(max(hw_block, 128), 128), HW_alloc)
        single_pass = hw_block >= HW

    if single_pass:
        hw_block = HW                     # full row: no lane padding, no mask
        n_x_bufs = 2
        per_row = tile_bytes(1, HW_alloc, 2)
        by_vmem = max(sub, _round_down(max(budget // per_row, 0), sub))
        if rows_block is None:
            rows_by_grid = _round_up(_cdiv(NC, 16), sub)   # aim >=16 row blocks
            rows_floor = _round_up(                        # keep tiles >= ~512 KiB
                _cdiv(512 * 1024, max(1, HW_alloc * itemsize)), sub)
            rows_block = max(rows_by_grid, rows_floor)
        else:
            rows_block = _round_up(rows_block, sub)
        rows_block = max(sub, _round_down(
            min(rows_block, by_vmem, _round_up(NC, sub)), sub))
        total = tile_bytes(rows_block, HW_alloc, 2)
        scratch = 0
    else:
        # Two-pass: squarer tile (more rows, moderate hw chunk, >=8 chunks per
        # pass) and a 3rd x buffer on 128 MiB parts to hide the pass-boundary
        # re-fetch of x.
        n_x_bufs = 2 if small_vmem else 3
        if rows_block is None:
            rows_block = max(sub, 64)
        else:
            rows_block = _round_up(rows_block, sub)
        rows_block = max(sub, _round_down(
            min(rows_block, _round_up(NC, sub)), sub))
        if hw_block is None:
            per_elem = (2 * (_N_STREAMS - 1) + n_x_bufs) * itemsize + 4
            hw_by_vmem = _round_down(
                max(budget // max(1, rows_block * per_elem), 128), 128)
            hw_by_chunks = _round_up(_cdiv(HW_alloc, 8), 128)
            hw_block = max(128, min(hw_by_vmem, hw_by_chunks, 32 * 1024, HW_alloc))
        total = tile_bytes(rows_block, hw_block, n_x_bufs)
        scratch = 2 * rows_block * 128 * 4

    ragged = (not single_pass) and (HW % hw_block != 0)
    vmem_limit = int(min(0.92 * cap,
                         max(32 * 1024 * 1024, total + scratch + 6 * 1024 * 1024)))
    return rows_block, hw_block, single_pass, ragged, n_x_bufs, vmem_limit


def _maybe_buffered_spec(block_shape, index_map, n_bufs):
    buffered = getattr(pl, "Buffered", None)
    if n_bufs > 2 and buffered is not None:
        try:
            return pl.BlockSpec(block_shape, index_map,
                                pipeline_mode=buffered(n_bufs))
        except TypeError:
            pass
    return pl.BlockSpec(block_shape, index_map)


# ------------------------------ wrapper -------------------------------------


@functools.partial(jax.jit, static_argnames=("rows_block", "hw_block"))
def guide_normalization(x, gamma1, beta1, gamma2, beta2, *,
                        rows_block=None, hw_block=None):
    """Pallas implementation of GuideNormalization.forward (NCHW inputs)."""
    N, C, H, W = x.shape
    NC, HW = N * C, H * W
    itemsize = jnp.dtype(x.dtype).itemsize

    (rows_block, hw_block, single_pass, ragged, n_x_bufs,
     vmem_limit) = _plan(NC, HW, itemsize, rows_block, hw_block)

    # Free reshapes only -- no HBM-doubling jnp.pad / output slice.
    x2, g1, b1, g2, b2 = (a.reshape(NC, HW)
                          for a in (x, gamma1, beta1, gamma2, beta2))
    inv_hw = 1.0 / HW
    n_rows = _cdiv(NC, rows_block)

    if single_pass:
        spec = pl.BlockSpec((rows_block, HW), lambda i: (i, 0))
        cost = pl.CostEstimate(flops=10 * NC * HW, transcendentals=NC,
                               bytes_accessed=_N_STREAMS * NC * HW * itemsize)
        out2 = pl.pallas_call(
            functools.partial(_guide_norm_single_pass_kernel, inv_hw=inv_hw),
            out_shape=jax.ShapeDtypeStruct((NC, HW), x.dtype),
            grid=(n_rows,),
            in_specs=[spec] * 5,
            out_specs=spec,
            compiler_params=pltpu.CompilerParams(
                dimension_semantics=("parallel",),
                vmem_limit_bytes=vmem_limit),
            cost_estimate=cost,
        )(x2, g1, b1, g2, b2)
    else:
        n_hw = _cdiv(HW, hw_block)
        x_spec = _maybe_buffered_spec((rows_block, hw_block),
                                      lambda r, p, h: (r, h), n_x_bufs)
        # Guides / output only matter in pass 1; `p * h` pins their block index
        # at (r, 0) during pass 0 so no extra DMA traffic happens there.
        g_spec = pl.BlockSpec((rows_block, hw_block), lambda r, p, h: (r, p * h))
        o_spec = pl.BlockSpec((rows_block, hw_block), lambda r, p, h: (r, p * h))
        cost = pl.CostEstimate(flops=10 * NC * HW, transcendentals=NC,
                               bytes_accessed=(_N_STREAMS + 1) * NC * HW * itemsize)
        out2 = pl.pallas_call(
            functools.partial(_guide_norm_two_pass_kernel, inv_hw=inv_hw,
                              hw=HW, hw_block=hw_block, ragged=ragged),
            out_shape=jax.ShapeDtypeStruct((NC, HW), x.dtype),
            grid=(n_rows, 2, n_hw),
            in_specs=[x_spec, g_spec, g_spec, g_spec, g_spec],
            out_specs=o_spec,
            scratch_shapes=[pltpu.VMEM((rows_block, 1), jnp.float32),
                            pltpu.VMEM((rows_block, 1), jnp.float32)],
            compiler_params=pltpu.CompilerParams(
                dimension_semantics=("parallel", "arbitrary", "arbitrary"),
                vmem_limit_bytes=vmem_limit),
            cost_estimate=cost,
        )(x2, g1, b1, g2, b2)

    return out2.reshape(N, C, H, W)


# ----------------------------- reference ------------------------------------


def _reference(x, gamma1, beta1, gamma2, beta2):
    mean = jnp.mean(x, axis=(2, 3), keepdims=True)
    var = jnp.mean((x - mean) ** 2, axis=(2, 3), keepdims=True)
    normalized = (x - mean) / jnp.sqrt(var + _EPS)
    return normalized * (1.0 + gamma1 * gamma2) + beta1 * beta2


if __name__ == "__main__":
    key = jax.random.PRNGKey(0)

    def make_inputs(shape):
        k = jax.random.split(key, 5)
        return tuple(jax.random.normal(k[i], shape, dtype=jnp.float32)
                     for i in range(5))

    # 1) Small lane-aligned shape: auto plan -> single-pass.
    shape = (2, 4, 16, 16)
    x, g1, b1, g2, b2 = make_inputs(shape)
    ref = _reference(x, g1, b1, g2, b2)
    out = jax.block_until_ready(guide_normalization(x, g1, b1, g2, b2))
    assert out.shape == shape and out.dtype == x.dtype
    assert jnp.allclose(out, ref, atol=1e-4, rtol=1e-4), "single-pass mismatch"

    # 2) Force the HW-blocked two-pass path (used for very large images).
    out2 = jax.block_until_ready(
        guide_normalization(x, g1, b1, g2, b2, rows_block=8, hw_block=128))
    assert jnp.allclose(out2, ref, atol=1e-4, rtol=1e-4), "two-pass mismatch"

    # 3) Ragged H*W (150, not a multiple of 128): single-pass, no wrapper pad.
    shape_r = (2, 4, 10, 15)
    xr, g1r, b1r, g2r, b2r = make_inputs(shape_r)
    ref_r = _reference(xr, g1r, b1r, g2r, b2r)
    out_r = jax.block_until_ready(guide_normalization(xr, g1r, b1r, g2r, b2r))
    assert out_r.shape == shape_r
    assert jnp.allclose(out_r, ref_r, atol=1e-4, rtol=1e-4), "ragged mismatch"

    # 4) Ragged H*W forced onto the two-pass path (exercises the lane mask).
    out_r2 = jax.block_until_ready(
        guide_normalization(xr, g1r, b1r, g2r, b2r, rows_block=8, hw_block=128))
    assert jnp.allclose(out_r2, ref_r, atol=1e-4, rtol=1e-4), \
        "ragged two-pass mismatch"

    print("KERNEL_OK")
</pallas_src>

<mosaic_0001>
module attributes {stable_mosaic.version = 11 : i64} {
  func.func @_guide_norm_single_pass_kernel(%arg0: i32, %arg1: memref<8x256xf32, #tpu.memory_space<vmem>>, %arg2: memref<8x256xf32, #tpu.memory_space<vmem>>, %arg3: memref<8x256xf32, #tpu.memory_space<vmem>>, %arg4: memref<8x256xf32, #tpu.memory_space<vmem>>, %arg5: memref<8x256xf32, #tpu.memory_space<vmem>>, %arg6: memref<8x256xf32, #tpu.memory_space<vmem>>) attributes {dimension_semantics = [#tpu.dimension_semantics<parallel>], iteration_bounds = array<i64: 1>, scalar_prefetch = 0 : i64, scratch_operands = 0 : i64, tpu.core_type = #tpu.core_type<tc>, window_params = [{transform_indices = @transform_0, window_bounds = array<i64: 8, 256>}, {transform_indices = @transform_1, window_bounds = array<i64: 8, 256>}, {transform_indices = @transform_2, window_bounds = array<i64: 8, 256>}, {transform_indices = @transform_3, window_bounds = array<i64: 8, 256>}, {transform_indices = @transform_4, window_bounds = array<i64: 8, 256>}, {transform_indices = @transform_5, window_bounds = array<i64: 8, 256>}]} {
    %c0 = arith.constant 0 : index
    %c0_0 = arith.constant 0 : index
    %0 = vector.load %arg1[%c0, %c0_0] : memref<8x256xf32, #tpu.memory_space<vmem>>, vector<8x256xf32>
    %cst = arith.constant dense<0.000000e+00> : vector<8xf32>
    %1 = vector.multi_reduction <add>, %0, %cst [1] : vector<8x256xf32> to vector<8xf32>
    %2 = vector.shape_cast %1 : vector<8xf32> to vector<8x1xf32>
    %3 = arith.mulf %0, %0 : vector<8x256xf32>
    %cst_1 = arith.constant dense<0.000000e+00> : vector<8xf32>
    %4 = vector.multi_reduction <add>, %3, %cst_1 [1] : vector<8x256xf32> to vector<8xf32>
    %5 = vector.shape_cast %4 : vector<8xf32> to vector<8x1xf32>
    %cst_2 = arith.constant 3.906250e-03 : f32
    %6 = vector.broadcast %cst_2 : f32 to vector<8x1xf32>
    %7 = arith.mulf %2, %6 : vector<8x1xf32>
    %cst_3 = arith.constant 3.906250e-03 : f32
    %8 = vector.broadcast %cst_3 : f32 to vector<8x1xf32>
    %9 = arith.mulf %5, %8 : vector<8x1xf32>
    %10 = arith.mulf %7, %7 : vector<8x1xf32>
    %11 = arith.subf %9, %10 : vector<8x1xf32>
    %cst_4 = arith.constant 0.000000e+00 : f32
    %12 = vector.broadcast %cst_4 : f32 to vector<8x1xf32>
    %13 = arith.maximumf %11, %12 : vector<8x1xf32>
    %cst_5 = arith.constant 9.99999974E-6 : f32
    %14 = vector.broadcast %cst_5 : f32 to vector<8x1xf32>
    %15 = arith.addf %13, %14 : vector<8x1xf32>
    %16 = math.rsqrt %15 : vector<8x1xf32>
    %c0_6 = arith.constant 0 : index
    %c0_7 = arith.constant 0 : index
    %17 = vector.load %arg2[%c0_6, %c0_7] : memref<8x256xf32, #tpu.memory_space<vmem>>, vector<8x256xf32>
    %c0_8 = arith.constant 0 : index
    %c0_9 = arith.constant 0 : index
    %18 = vector.load %arg4[%c0_8, %c0_9] : memref<8x256xf32, #tpu.memory_space<vmem>>, vector<8x256xf32>
    %19 = arith.mulf %17, %18 : vector<8x256xf32>
    %c0_10 = arith.constant 0 : index
    %c0_11 = arith.constant 0 : index
    %20 = vector.load %arg3[%c0_10, %c0_11] : memref<8x256xf32, #tpu.memory_space<vmem>>, vector<8x256xf32>
    %c0_12 = arith.constant 0 : index
    %c0_13 = arith.constant 0 : index
    %21 = vector.load %arg5[%c0_12, %c0_13] : memref<8x256xf32, #tpu.memory_space<vmem>>, vector<8x256xf32>
    %22 = arith.mulf %20, %21 : vector<8x256xf32>
    %c0_14 = arith.constant 0 : index
    %c0_15 = arith.constant 0 : index
    %23 = vector.load %arg1[%c0_14, %c0_15] : memref<8x256xf32, #tpu.memory_space<vmem>>, vector<8x256xf32>
    %24 = vector.broadcast %7 : vector<8x1xf32> to vector<8x256xf32>
    %25 = arith.subf %23, %24 : vector<8x256xf32>
    %26 = vector.broadcast %16 : vector<8x1xf32> to vector<8x256xf32>
    %27 = arith.mulf %25, %26 : vector<8x256xf32>
    %cst_16 = arith.constant 1.000000e+00 : f32
    %28 = vector.broadcast %cst_16 : f32 to vector<8x256xf32>
    %29 = arith.addf %28, %19 : vector<8x256xf32>
    %30 = arith.mulf %27, %29 : vector<8x256xf32>
    %31 = arith.addf %30, %22 : vector<8x256xf32>
    %c0_17 = arith.constant 0 : index
    %c0_18 = arith.constant 0 : index
    %32 = vector.load %arg6[%c0_17, %c0_18] : memref<8x256xf32, #tpu.memory_space<vmem>>, vector<8x256xf32>
    tpu.vector_store %arg6[%c0_17, %c0_18], %31 {strides = array<i32>} : memref<8x256xf32, #tpu.memory_space<vmem>>, vector<8x256xf32>,
    return
  }
  func.func @transform_0(%arg0: i32) -> (i32, i32) {
    %c0_i32 = arith.constant 0 : i32
    %c0_i32_0 = arith.constant 0 : i32
    return %arg0, %c0_i32 : i32, i32
  }
  func.func @transform_1(%arg0: i32) -> (i32, i32) {
    %c0_i32 = arith.constant 0 : i32
    %c0_i32_0 = arith.constant 0 : i32
    return %arg0, %c0_i32 : i32, i32
  }
  func.func @transform_2(%arg0: i32) -> (i32, i32) {
    %c0_i32 = arith.constant 0 : i32
    %c0_i32_0 = arith.constant 0 : i32
    return %arg0, %c0_i32 : i32, i32
  }
  func.func @transform_3(%arg0: i32) -> (i32, i32) {
    %c0_i32 = arith.constant 0 : i32
    %c0_i32_0 = arith.constant 0 : i32
    return %arg0, %c0_i32 : i32, i32
  }
  func.func @transform_4(%arg0: i32) -> (i32, i32) {
    %c0_i32 = arith.constant 0 : i32
    %c0_i32_0 = arith.constant 0 : i32
    return %arg0, %c0_i32 : i32, i32
  }
  func.func @transform_5(%arg0: i32) -> (i32, i32) {
    %c0_i32 = arith.constant 0 : i32
    %c0_i32_0 = arith.constant 0 : i32
    return %arg0, %c0_i32 : i32, i32
  }
}

</mosaic_0001>

<bundles_post_ra>
// kernel: guide_normalization.1
= control target key start
LH: loop header
LB: loop body
LE: loop exit
PB: predicated region body
PF: predicated region fallthrough
CT: control target
= control target key end

     0   :  { %s142_s0 = inlined_call_operand.vmem [shape: f32[8,256], index: 0, kind: input, shape index: {}]   ;;  %s143_s1 = inlined_call_operand.vmem [shape: f32[8,256], index: 1, kind: input, shape index: {}]   ;;  %s144_s3 = inlined_call_operand.vmem [shape: f32[8,256], index: 3, kind: input, shape index: {}]   ;;  %s145_s2 = inlined_call_operand.vmem [shape: f32[8,256], index: 2, kind: input, shape index: {}]   ;;  %s146_s4 = inlined_call_operand.vmem [shape: f32[8,256], index: 4, kind: input, shape index: {}]   ;;  %s147_s5 = inlined_call_operand.vmem [shape: f32[8,256], index: 5, kind: output, shape index: {}]  }
   0x1   :  { %v20_v0 = vld [vmem:[%s142_s0] sm:$0xff]  ;;  %v21_v1 = vld [vmem:[%s142_s0 + $0x8] sm:$0xff] }
   0x2   :  { %v22_v2 = vadd.f32 %v21_v1, %v20_v0  ;;  %v25_v3 = vmul.f32 %v20_v0, %v20_v0  ;;  %v26_v4 = vmul.f32 %v21_v1, %v21_v1  ;;  %v46_v16 = vld [vmem:[%s143_s1] sm:$0xff]  ;;  %v47_v17 = vld [vmem:[%s143_s1 + $0x8] sm:$0xff] }
   0x3   :  { %v48_v18 = vld [vmem:[%s144_s3] sm:$0xff]  ;;  %v49_v19 = vld [vmem:[%s144_s3 + $0x8] sm:$0xff] }
   0x4   :  { %23 = vadd.xlane.f32.xlu0 %v22_v2  ;;  %v27_v5 = vadd.f32 %v26_v4, %v25_v3  ;;  %v50_v22 = vmul.f32 %v48_v18, %v46_v16  ;;  %v51_v23 = vmul.f32 %v49_v19, %v47_v17  ;;  %v52_v25 = vld [vmem:[%s145_s2] sm:$0xff]  ;;  %v53_v26 = vld [vmem:[%s145_s2 + $0x8] sm:$0xff] }
   0x5   :  { %v54_v27 = vld [vmem:[%s146_s4] sm:$0xff]  ;;  %v55_v28 = vld [vmem:[%s146_s4 + $0x8] sm:$0xff] }
   0x6   :  { %v62_v32 = vadd.f32 1.0, %v50_v22  ;;  %v63_v33 = vadd.f32 1.0, %v51_v23  ;;  %v56_v35 = vmul.f32 %v54_v27, %v52_v25  ;;  %v57_v36 = vmul.f32 %v55_v28, %v53_v26 }
   0xc   :  { %28 = vadd.xlane.f32.xlu0 %v27_v5 }
  0x77   :  { %v24_v6 = vpop.xlane.xlu0 %23 }
  0x78   :  { %v30_v7 = vmul.f32 0.00390625, %v24_v6 }
  0x7a   :  { %v32_v9 = vmul.f32 %v30_v7, %v30_v7  ;;  %v58_v30 = vsub.f32 %v20_v0, %v30_v7  ;;  %v59_v31 = vsub.f32 %v21_v1, %v30_v7 }
  0x7f   :  { %v29_v8 = vpop.xlane.xlu0 %28 }
  0x80   :  { %v31_v10 = vmul.f32 0.00390625, %v29_v8 }
  0x82   :  { %v33_v11 = vsub.f32 %v31_v10, %v32_v9 }
  0x84   :  { %v34_v12 = vmax.f32 %v33_v11, 0.0 }
  0x86   :  { %v35_v13 = vadd.f32 1e-05, %v34_v12 }
  0x88   :  { %74 = vrsqrt.f32 %v35_v13  ;;  %vm42_vm1 = vweird.f32 %v35_v13 }
  0x8e   :  { %v75_v14 = vpop.eup %74 }
  0x8f   :  { %v37_v15 = vmul.f32 %v75_v14, %v35_v13  ;;  %vm43_vm0 = vweird.f32 %v75_v14 }
  0x90   :  { %vm44_vm2 = vmor %vm42_vm1, %vm43_vm0 }
  0x91   :  { %v38_v20 = vmul.f32 %v75_v14, %v37_v15 }
  0x93   :  { %v39_v21 = vmul.f32 0.5, %v38_v20 }
  0x95   :  { %v40_v24 = vsub.f32 1.5, %v39_v21 }
  0x97   :  { %v41_v29 = vmul.f32 %v75_v14, %v40_v24 }
  0x99   :  { %v45_v34 = vsel %vm44_vm2, %v75_v14, %v41_v29 }
  0x9a   :  { %v60_v37 = vmul.f32 %v58_v30, %v45_v34  ;;  %v61_v38 = vmul.f32 %v59_v31, %v45_v34 }
  0x9c   :  { %v64_v39 = vmul.f32 %v62_v32, %v60_v37  ;;  %v65_v40 = vmul.f32 %v63_v33, %v61_v38 }
  0x9e   :  { %v66_v41 = vadd.f32 %v64_v39, %v56_v35  ;;  %v67_v42 = vadd.f32 %v65_v40, %v57_v36 }
  0xa0   :  { %68 = vst [vmem:[%s147_s5] sm:$0xff] %v66_v41 }
  0xa1   :  { %69 = vst [vmem:[%s147_s5 + $0x8] sm:$0xff] %v67_v42 }

</bundles_post_ra>
